<compile_context>
chip_gen: v6e
topology: v6e:2x2x1
jax: 0.10.0
libtpu: 0.0.40
codegen_flags: <defaults>
</compile_context>

<pallas_src>
import jax
import jax.numpy as jnp
from jax import lax
from jax.experimental import pallas as pl
from jax.experimental.pallas import tpu as pltpu


def _round_up(x, m):
    return ((x + m - 1) // m) * m


def _choose_tiles(B, S, H, itemsize):
    """Pick (b_tile, s_tile) so the emb block stays ~4 MiB (double-buffered
    blocks fit comfortably even in v7x's 64 MiB VMEM) and the projection's M
    dimension is MXU-friendly (up to 256 rows)."""
    b_tile = min(_round_up(B, 8), 256)
    budget = 4 * 1024 * 1024
    s_tile = budget // max(1, b_tile * H * itemsize)
    s_tile = (s_tile // 8) * 8
    s_tile = max(8, min(_round_up(S, 8), s_tile if s_tile >= 8 else 8))
    return b_tile, s_tile


def proxy_kernel(lens_ref, emb_ref, w_ref, b_ref, out_ref, acc_ref):
    """lens_ref: [Bt,1] i32, emb_ref: [Bt,St,H], w_ref: [H,P], b_ref: [1,P],
    out_ref: [Bt,P], acc_ref: [Bt,H] f32 scratch (lives across the S grid axis)."""
    s_idx = pl.program_id(1)
    b_tile, s_tile, _ = emb_ref.shape

    @pl.when(s_idx == 0)
    def _():
        acc_ref[...] = jnp.zeros_like(acc_ref)

    # Per-chunk weights: valid-token mask with 1/len folded in.
    lens = lens_ref[...]                                               # [Bt,1] i32
    pos = lax.broadcasted_iota(jnp.int32, (b_tile, s_tile), 1) + s_idx * s_tile
    inv_len = pl.reciprocal(jnp.maximum(lens, 1).astype(jnp.float32),
                            approx=True)                               # EUP, free slot
    weights = jnp.where(pos < lens, inv_len, 0.0)                      # [Bt,St] f32

    # Weighted sum over the sequence chunk: VPU multiply + sublane reduce.
    # (Keeps the MXU free for the real projection matmul below.)
    acc_ref[...] += jnp.sum(emb_ref[...] * weights[:, :, None], axis=1)

    @pl.when(s_idx == pl.num_programs(1) - 1)
    def _():
        out = jnp.dot(acc_ref[...], w_ref[...],
                      preferred_element_type=jnp.float32) + b_ref[...]
        out_ref[...] = out.astype(out_ref.dtype)


def proxy_model_forward(text, text_lengths, emb_table, w_proj, b_proj,
                        *, b_tile=None, s_tile=None):
    """Mirrors ProxyModel.forward(text, text_lengths)."""
    # Glue: embedding lookup (gather) stays in plain JAX.
    emb = emb_table[text]                                              # [B, S, H]
    B, S, H = emb.shape
    P = w_proj.shape[1]

    if b_tile is None or s_tile is None:
        bt, st = _choose_tiles(B, S, H, jnp.dtype(emb.dtype).itemsize)
        b_tile = b_tile or bt
        s_tile = s_tile or st

    B_pad = _round_up(B, b_tile)
    S_pad = _round_up(S, s_tile)
    if B_pad != B or S_pad != S:
        emb = jnp.pad(emb, ((0, B_pad - B), (0, S_pad - S), (0, 0)))
    lens = jnp.pad(text_lengths.astype(jnp.int32), (0, B_pad - B)).reshape(B_pad, 1)

    nb = B_pad // b_tile
    ns = S_pad // s_tile

    grid_spec = pltpu.PrefetchScalarGridSpec(
        num_scalar_prefetch=0,
        grid=(nb, ns),                      # reduction (S) axis last
        in_specs=[
            pl.BlockSpec((b_tile, 1), lambda i, s: (i, 0)),            # lengths
            pl.BlockSpec((b_tile, s_tile, H), lambda i, s: (i, s, 0)),  # emb tile
            pl.BlockSpec((H, P), lambda i, s: (0, 0)),                 # W resident
            pl.BlockSpec((1, P), lambda i, s: (0, 0)),                 # b resident
        ],
        out_specs=pl.BlockSpec((b_tile, P), lambda i, s: (i, 0)),
        scratch_shapes=[pltpu.VMEM((b_tile, H), jnp.float32)],
    )

    out = pl.pallas_call(
        proxy_kernel,
        out_shape=jax.ShapeDtypeStruct((B_pad, P), jnp.float32),
        grid_spec=grid_spec,
        compiler_params=pltpu.CompilerParams(
            dimension_semantics=("parallel", "arbitrary"),
            vmem_limit_bytes=32 * 1024 * 1024,
        ),
    )(lens, emb, w_proj, b_proj.reshape(1, P))
    return out[:B]


if __name__ == "__main__":
    # Small, deterministic problem sizes; tiles chosen to exercise the grid
    # (3 batch tiles x 3 sequence tiles, with batch and sequence padding).
    B, S, H, P, V = 40, 80, 128, 128, 64

    key = jax.random.PRNGKey(0)
    k_emb, k_w, k_b, k_tok, k_len = jax.random.split(key, 5)

    emb_table = jax.random.normal(k_emb, (V, H), dtype=jnp.float32) * 0.02
    w_proj = jax.random.normal(k_w, (H, P), dtype=jnp.float32) * 0.05
    b_proj = jax.random.normal(k_b, (P,), dtype=jnp.float32) * 0.01

    text = jax.random.randint(k_tok, (B, S), 0, V, dtype=jnp.int32)
    text_lengths = jax.random.randint(k_len, (B,), 1, S + 1, dtype=jnp.int32)

    out = proxy_model_forward(text, text_lengths, emb_table, w_proj, b_proj,
                              b_tile=16, s_tile=32)
    out = jax.block_until_ready(out)

    # Pure-JAX reference (masked-mean pooling + linear head).
    emb = emb_table[text]
    mask = (jnp.arange(S)[None, :] < text_lengths[:, None]).astype(jnp.float32)
    pooled = (mask[:, :, None] * emb).sum(axis=1) / text_lengths[:, None].astype(jnp.float32)
    ref = pooled @ w_proj + b_proj

    assert out.shape == ref.shape, "shape mismatch vs reference"
    # approx reciprocal (EUP) introduces ~1e-3-level relative error in 1/len.
    assert jnp.allclose(out, ref, atol=1e-2, rtol=1e-2), "kernel mismatch vs reference"

    print("KERNEL_OK")
</pallas_src>

<mosaic_0001>
module attributes {stable_mosaic.version = 11 : i64} {
  func.func @proxy_kernel(%arg0: i32, %arg1: i32, %arg2: memref<16x1xi32, #tpu.memory_space<vmem>>, %arg3: memref<16x32x128xf32, #tpu.memory_space<vmem>>, %arg4: memref<128x128xf32, #tpu.memory_space<vmem>>, %arg5: memref<1x128xf32, #tpu.memory_space<vmem>>, %arg6: memref<16x128xf32, #tpu.memory_space<vmem>>, %arg7: memref<16x128xf32, #tpu.memory_space<vmem>>) attributes {dimension_semantics = [#tpu.dimension_semantics<parallel>, #tpu.dimension_semantics<arbitrary>], iteration_bounds = array<i64: 3, 3>, scalar_prefetch = 0 : i64, scratch_operands = 1 : i64, tpu.core_type = #tpu.core_type<tc>, window_params = [{transform_indices = @transform_0, window_bounds = array<i64: 16, 1>}, {transform_indices = @transform_1, window_bounds = array<i64: 16, 32, 128>}, {pipeline_mode = #tpu.pipeline_mode<synchronous>, transform_indices = @transform_2, window_bounds = array<i64: 128, 128>}, {pipeline_mode = #tpu.pipeline_mode<synchronous>, transform_indices = @transform_3, window_bounds = array<i64: 1, 128>}, {transform_indices = @transform_4, window_bounds = array<i64: 16, 128>}]} {
    %c0_i32 = arith.constant 0 : i32
    %0 = arith.cmpi eq, %arg1, %c0_i32 : i32
    %1 = arith.extui %0 : i1 to i32
    %c0_i32_0 = arith.constant 0 : i32
    %2 = arith.cmpi ne, %1, %c0_i32_0 : i32
    scf.if %2 {
      %cst_11 = arith.constant 0.000000e+00 : f32
      %29 = vector.broadcast %cst_11 : f32 to vector<16x128xf32>
      %c0_12 = arith.constant 0 : index
      %c0_13 = arith.constant 0 : index
      %30 = vector.load %arg7[%c0_12, %c0_13] : memref<16x128xf32, #tpu.memory_space<vmem>>, vector<16x128xf32>
      tpu.vector_store %arg7[%c0_12, %c0_13], %29 {strides = array<i32>} : memref<16x128xf32, #tpu.memory_space<vmem>>, vector<16x128xf32>,
    } else {
    }
    %c0 = arith.constant 0 : index
    %c0_1 = arith.constant 0 : index
    %3 = vector.load %arg2[%c0, %c0_1] : memref<16x1xi32, #tpu.memory_space<vmem>>, vector<16x1xi32>
    %4 = tpu.iota {dimensions = array<i32: 1>} : vector<16x32xi32>
    %c32_i32 = arith.constant 32 : i32
    %5 = arith.muli %arg1, %c32_i32 : i32
    %6 = vector.broadcast %5 : i32 to vector<16x32xi32>
    %7 = arith.addi %4, %6 : vector<16x32xi32>
    %c1_i32 = arith.constant 1 : i32
    %8 = vector.broadcast %c1_i32 : i32 to vector<16x1xi32>
    %9 = arith.maxsi %3, %8 : vector<16x1xi32>
    %10 = arith.sitofp %9 : vector<16x1xi32> to vector<16x1xf32>
    %11 = tpu.reciprocal %10 {approx = true} : vector<16x1xf32> -> vector<16x1xf32>
    %12 = vector.broadcast %3 : vector<16x1xi32> to vector<16x32xi32>
    %13 = arith.cmpi slt, %7, %12 : vector<16x32xi32>
    %cst = arith.constant 0.000000e+00 : f32
    %14 = vector.shape_cast %11 : vector<16x1xf32> to vector<16x1xf32>
    %15 = vector.broadcast %14 : vector<16x1xf32> to vector<16x32xf32>
    %16 = vector.broadcast %cst : f32 to vector<16x32xf32>
    %17 = arith.select %13, %15, %16 : vector<16x32xi1>, vector<16x32xf32>
    %c0_2 = arith.constant 0 : index
    %c0_3 = arith.constant 0 : index
    %18 = vector.load %arg7[%c0_2, %c0_3] : memref<16x128xf32, #tpu.memory_space<vmem>>, vector<16x128xf32>
    %c0_4 = arith.constant 0 : index
    %c0_5 = arith.constant 0 : index
    %c0_6 = arith.constant 0 : index
    %19 = vector.load %arg3[%c0_4, %c0_5, %c0_6] : memref<16x32x128xf32, #tpu.memory_space<vmem>>, vector<16x32x128xf32>
    %20 = vector.shape_cast %17 : vector<16x32xf32> to vector<16x32x1xf32>
    %21 = vector.broadcast %20 : vector<16x32x1xf32> to vector<16x32x128xf32>
    %22 = arith.mulf %19, %21 : vector<16x32x128xf32>
    %cst_7 = arith.constant dense<0.000000e+00> : vector<16x128xf32>
    %23 = vector.multi_reduction <add>, %22, %cst_7 [1] : vector<16x32x128xf32> to vector<16x128xf32>
    %24 = arith.addf %18, %23 : vector<16x128xf32>
    %c0_8 = arith.constant 0 : index
    %c0_9 = arith.constant 0 : index
    %25 = vector.load %arg7[%c0_8, %c0_9] : memref<16x128xf32, #tpu.memory_space<vmem>>, vector<16x128xf32>
    tpu.vector_store %arg7[%c0_8, %c0_9], %24 {strides = array<i32>} : memref<16x128xf32, #tpu.memory_space<vmem>>, vector<16x128xf32>,
    %c2_i32 = arith.constant 2 : i32
    %26 = arith.cmpi eq, %arg1, %c2_i32 : i32
    %27 = arith.extui %26 : i1 to i32
    %c0_i32_10 = arith.constant 0 : i32
    %28 = arith.cmpi ne, %27, %c0_i32_10 : i32
    scf.if %28 {
      %c0_11 = arith.constant 0 : index
      %c0_12 = arith.constant 0 : index
      %29 = vector.load %arg7[%c0_11, %c0_12] : memref<16x128xf32, #tpu.memory_space<vmem>>, vector<16x128xf32>
      %c0_13 = arith.constant 0 : index
      %c0_14 = arith.constant 0 : index
      %30 = vector.load %arg4[%c0_13, %c0_14] : memref<128x128xf32, #tpu.memory_space<vmem>>, vector<128x128xf32>
      %cst_15 = arith.constant dense<0.000000e+00> : vector<16x128xf32>
      %31 = tpu.matmul %29, %30, %cst_15 {dimension_numbers = #tpu.dot_dimension_numbers<[1], [0], [0], [1], [0, 0, 1, 1], [], []>} : vector<16x128xf32>, vector<128x128xf32>, vector<16x128xf32> -> vector<16x128xf32>
      %c0_16 = arith.constant 0 : index
      %c0_17 = arith.constant 0 : index
      %32 = vector.load %arg5[%c0_16, %c0_17] : memref<1x128xf32, #tpu.memory_space<vmem>>, vector<1x128xf32>
      %33 = vector.broadcast %32 : vector<1x128xf32> to vector<16x128xf32>
      %34 = arith.addf %31, %33 : vector<16x128xf32>
      %c0_18 = arith.constant 0 : index
      %c0_19 = arith.constant 0 : index
      %35 = vector.load %arg6[%c0_18, %c0_19] : memref<16x128xf32, #tpu.memory_space<vmem>>, vector<16x128xf32>
      tpu.vector_store %arg6[%c0_18, %c0_19], %34 {strides = array<i32>} : memref<16x128xf32, #tpu.memory_space<vmem>>, vector<16x128xf32>,
    } else {
    }
    return
  }
  func.func @transform_0(%arg0: i32, %arg1: i32) -> (i32, i32) {
    %c0_i32 = arith.constant 0 : i32
    %c0_i32_0 = arith.constant 0 : i32
    return %arg0, %c0_i32 : i32, i32
  }
  func.func @transform_1(%arg0: i32, %arg1: i32) -> (i32, i32, i32) {
    %c0_i32 = arith.constant 0 : i32
    %c0_i32_0 = arith.constant 0 : i32
    return %arg0, %arg1, %c0_i32 : i32, i32, i32
  }
  func.func @transform_2(%arg0: i32, %arg1: i32) -> (i32, i32) {
    %c0_i32 = arith.constant 0 : i32
    %c0_i32_0 = arith.constant 0 : i32
    %c0_i32_1 = arith.constant 0 : i32
    return %c0_i32, %c0_i32_0 : i32, i32
  }
  func.func @transform_3(%arg0: i32, %arg1: i32) -> (i32, i32) {
    %c0_i32 = arith.constant 0 : i32
    %c0_i32_0 = arith.constant 0 : i32
    %c0_i32_1 = arith.constant 0 : i32
    return %c0_i32, %c0_i32_0 : i32, i32
  }
  func.func @transform_4(%arg0: i32, %arg1: i32) -> (i32, i32) {
    %c0_i32 = arith.constant 0 : i32
    %c0_i32_0 = arith.constant 0 : i32
    return %arg0, %c0_i32 : i32, i32
  }
}

</mosaic_0001>

<bundles_post_ra>
// kernel: tpu_custom_call.1
= control target key start
LH: loop header
LB: loop body
LE: loop exit
PB: predicated region body
PF: predicated region fallthrough
CT: control target
= control target key end

     0   :  { %s2067_s0 = inlined_call_operand.vmem [shape: s32[48,1], index: 0, kind: input, shape index: {}]   ;;  %s2068_s1 = inlined_call_operand.hbm [shape: f32[48,96,128], index: 1, kind: input, shape index: {}]   ;;  %s2069_s2 = inlined_call_operand.hbm [shape: f32[128,128], index: 2, kind: input, shape index: {}]   ;;  %s2070_s3 = inlined_call_operand.hbm [shape: f32[1,128], index: 3, kind: input, shape index: {}]   ;;  %s2071_s4 = inlined_call_operand.hbm [shape: f32[48,128], index: 4, kind: output, shape index: {}]  }
   0x1   :  { %2081 = sst [smem:[#allocation24_spill]] %s2069_s2 }
   0x2   :  { %2082 = sst [smem:[#allocation25_spill]] %s2070_s3 }
   0x3   :  { %9 = vsyncpa [#allocation4], 0 }
   0x4   :  { %11 = vsyncpa [#allocation4 + $0x1], 0 }
   0x5   :  { %12 = vsyncpa [#allocation7], 0 }
   0x6   :  { %13 = vsyncpa [#allocation5], 0 }
   0x7   :  { %15 = vsyncpa [#allocation5 + $0x1], 0  ;;  %s1655_s15 = smov 0   ;;  %s1657_s16 = smov 0  }
   0x8   :  { %s1659_s17 = smov 0   ;;  %s1661_s18 = smov 0  }
   0x9   :  { %s1663_s19 = smov 0   ;;  %s1665_s20 = smov 0  }
   0xa   :  { %s1667_s21 = smov 0   ;;  %s1669_s22 = smov 0  }
   0xb   :  { %s1671_s23 = smov 0   ;;  %s1673_s24 = smov 0  }
   0xc   :  { %s1675_s25 = smov 0  }
   0xd LB: > { %2083 = sst [smem:[#allocation16_spill]] %s1581_s17  ;;  %s1210_s26 = sadd.s32 4294967295, %s1613_s25   ;;  %s1613_s25 = sphi %s1675_s25, %s21_s25   ;;  %s1609_s24 = sphi %s1673_s24, %s2110_s24   ;;  %s1605_s23 = sphi %s1671_s23, %s2109_s23   ;;  %s1601_s22 = sphi %s1669_s22, %s2108_s22   ;;  %s1597_s21 = sphi %s1667_s21, %s2107_s21   ;;  %s1593_s20 = sphi %s1665_s20, %s2106_s20   ;;  %s1589_s19 = sphi %s1663_s19, %s2114_s19   ;;  %s1585_s18 = sphi %s1661_s18, %s2113_s18   ;;  %s1581_s17 = sphi %s1659_s17, %s2104_s17   ;;  %s1577_s16 = sphi %s1657_s16, %s2112_s16   ;;  %s1573_s15 = sphi %s1655_s15, %s2111_s15  }
   0xe   : > { %2084 = sst [smem:[#allocation17_spill]] %s1593_s20  ;;  %s1211_s27 = sadd.s32 4294967294, %s1613_s25  }
   0xf   : > { %2085 = sst [smem:[#allocation18_spill]] %s1605_s23  ;;  %s30_s28 = sadd.s32 1, %s1605_s23 }
  0x10   : > { %2086 = sst [smem:[#allocation19_spill]] %s1609_s24  ;;  %s33_s29 = sadd.s32 1, %s1609_s24 }
  0x11   : > { %p31_p0 = scmp.ge.s32.totalorder %s30_s28, 3  ;;  %s68_s30 = sadd.s32 1, %s1593_s20 }
  0x12   : > { %p75_p1 = scmp.ne.s32.totalorder %s1593_s20, %s1589_s19  ;;  %p76_p2 = scmp.eq.s32.totalorder %s1613_s25, 0 }
  0x13   : > { %s2116_s28 = smov (%p31_p0, %s30_s28), 0  ;;  %s2118_s29 = smov (!%p31_p0, %s33_s29), %s1609_s24 }
  0x14   : > { %2087 = sst [smem:[#allocation20_spill]] %s2116_s28  ;;  %s64_s5 = ssub.s32 %s1605_s23, %s2116_s28 }
  0x15   : > { %p1721_p3 = por %p76_p2, %p75_p1  ;;  %p35_p4 = scmp.ge.s32.totalorder %s2118_s29, 3 }
  0x16   : > { %p81_p5 = scmp.ne.s32.totalorder %s1589_s19, %s1585_s18  ;;  %p1726_p6 = scmp.eq.s32.totalorder %s1210_s26, 0 }
  0x17   : > { %s136_s8 = sadd.s32 1, %s1581_s17  ;;  %s2120_s29 = smov (%p35_p4, %s2118_s29), 0 }
  0x18   : > { %s2089_s7 = scalar_select %p1726_p6, 1, 0 }
  0x19   : > { %2090 = sst [smem:[#allocation21_spill]] %s2120_s29  ;;  %p1735_p7 = por %p1726_p6, %p81_p5 }
  0x1a   : > { %p146_p8 = scmp.ne.s32.totalorder %s1581_s17, %s1577_s16  ;;  %s63_s10 = ssub.s32 %s1609_s24, %s2120_s29 }
  0x1b   : > { %p147_p9 = scmp.eq.s32.totalorder %s1210_s26, 8  ;;  %s65_s11 = sor.u32 %s64_s5, %s63_s10 }
  0x1c   : > { %p134_p10 = scmp.eq.s32.totalorder %s63_s10, 0  ;;  %p66_p11 = scmp.eq.s32.totalorder %s65_s11, 0 }
  0x1d   : > { %p1743_p12 = por %p147_p9, %p146_p8  ;;  %p152_p13 = scmp.ne.s32.totalorder %s1577_s16, %s1573_s15 }
  0x1e   : > { %s1748_s13 = scalar_select %p134_p10, %s1581_s17, %s136_s8  }
  0x1f   : > { %s2092_s12 = scalar_select %p1743_p12, 1, 0 }
  0x20   : > { %2093 = sst [smem:[#allocation22_spill]] %s1748_s13  ;;  %p153_p0 = scmp.eq.s32.totalorder %s1211_s27, 8 }
  0x21   : > { %s1751_s14 = scalar_select %p66_p11, %s1593_s20, %s68_s30  }
  0x22   : > { %p1212_p1 = scmp.ge.s32.totalorder %s1613_s25, 1  ;;  %p160_p2 = scmp.lt.s32.totalorder %s1613_s25, 10 }
  0x23   : > { %2094 = sst [smem:[#allocation23_spill]] %s1751_s14  ;;  %p1757_p4 = por %p153_p0, %p152_p13 }
  0x24   : > { %p1761_p5 = pnand %p1212_p1, %p160_p2  ;;  %s1615_s5 = smov [#allocation6]  }
  0x25   : > { %s2095_s18 = scalar_select %p1757_p4, 1, 0 }
  0x26   : > { %s172_s10 = sshll.u32 %s1615_s5, 4  ;;  %p1313_p8 = pneg %p1761_p5  ;;  %s173_s10 = int_to_ptr.vmem [resolvable:$true] %s172_s10 }
  0x27   : > { %s1616_s27 = smov [#allocation8]   ;;  %s1448_s11 = scalar_lea.vmem %s173_s10, 2048 }
  0x28   : > { %p1769_p9 = pnand %p1313_p8, %p1726_p6  ;;  %s186_s8 = sshll.u32 %s1616_s27, 4  ;;  %s187_s8 = int_to_ptr.vmem [resolvable:$true] %s186_s8 }
  0x29   : > { %p1449_p11 = scmp.ne.s32.totalorder %s173_s10, %s1448_s11  ;;  %p1456_p1 = scmp.lt.s32.totalorder %s173_s10, %s173_s10 }
  0x2a   : > { %p1439_p10 = pneg %p1769_p9  ;;  %p1457_p2 = scmp.lt.s32.totalorder %s1448_s11, %s1448_s11 }
  0x2c   : > { %p1451_p13 = pnand %p1449_p11, %p1439_p10  ;;  %p1458_p4 = por %p1457_p2, %p1456_p1 }
  0x2e   : > { %p1452_p0 = pneg %p1451_p13 }
  0x30   : > { %p1459_p8 = pnand %p1458_p4, %p1452_p0 }
  0x32   : > { %1462 = shalt.err (!%p1459_p8)
}
  0x33   : > { %s1617_s5 = smov 128   ;;  %s1618_s29 = smov 8  }
  0x34   : > { %s2098_s2 = sld [smem:[#allocation24_spill]]  ;;  %s1474_s14 = scalar_lea.vmem %s187_s8, 16 }
  0x35   : > { %p1475_p12 = scmp.ne.s32.totalorder %s187_s8, %s1474_s14  ;;  %s1481_s13 = scalar_lea.vmem %s187_s8, 32 }
  0x36   : > { %p1482_p6 = scmp.lt.s32.totalorder %s187_s8, %s187_s8  ;;  %p1483_p1 = scmp.lt.s32.totalorder %s1481_s13, %s1474_s14 }
  0x37   : > { %p1477_p11 = pnand %p1475_p12, %p1439_p10 }
  0x38   : > { %p1484_p4 = por %p1483_p1, %p1482_p6 }
  0x39   : > { %p1478_p13 = pneg %p1477_p11 }
  0x3a   : > { %1316 = dma.hbm_to_vmem [thread:$0]  (!%p1769_p9), %s2098_s2, 2048, %s173_s10, [#allocation7], %s1617_s5, %s1617_s5, %s1618_s29  }
  0x3b   : > { %p1485_p0 = pnand %p1484_p4, %p1478_p13 }
  0x3d   : > { %1488 = shalt.err (!%p1485_p0)
}
  0x3e   : > { %s2099_s3 = sld [smem:[#allocation25_spill]]  ;;  %p1215_p2 = scmp.ge.s32.totalorder %s1613_s25, 9 }
  0x40   : > { %193 = sbr.rel (%p1215_p2) target bundleno = 84 (0x54), region = 24 }
  0x44   : > { %1319 = dma.hbm_to_vmem [thread:$0]  (!%p1769_p9), %s2099_s3, 16, %s187_s8, [#allocation7]  }
  0x45   : > { %s206_s28 = sand.u32 1, %s1593_s20   ;;  %s1218_s29 = sshll.u32 %s1605_s23, 2 }
  0x46   : > { %s1216_s13 = sshll.u32 %s206_s28, 9  ;;  %s1293_s14 = smul.u32 192, %s1609_s24 }
  0x47   : > { %s1298_s10 = scalar_select %p1721_p3, [#allocation0], [#allocation12] }
  0x48   : > { %s217_s30 = sadd.s32 %s1293_s14, %s1218_s29  ;;  %s210_s17 = scalar_lea.vmem [#allocation3], %s1216_s13 }
  0x49   : > { %s232_s8 = sshll.u32 %s210_s17, 4  ;;  %s1220_s5 = sshll.u32 %s217_s30, 7  ;;  %s233_s8 = int_to_ptr.vmem [resolvable:$true] %s232_s8 }
  0x4a   : > { %s224_s27 = sld [smem:[%s1298_s10]]   ;;  %s219_s3 = scalar_lea.hbm %s2068_s1, %s1220_s5 }
  0x4b   : > { %s1619_s23 = smov 1536   ;;  %s1620_s24 = smov 512  }
  0x4c   : > { %1299 = sst [smem:[#allocation11]] (%p1721_p3), %s1619_s23  ;;  %s1621_s20 = smov 4  }
  0x4d   : > { %1300 = sst [smem:[#allocation11 + $0x1]] (%p1721_p3), %s1620_s24  ;;  %s1622_s13 = smov 128  }
  0x4e   : > { %1301 = sst [smem:[#allocation11 + $0x2]] (%p1721_p3), %s1621_s20  ;;  %s1623_s2 = smov 8  }
  0x4f   : > { %1302 = sst [smem:[#allocation11 + $0x3]] (%p1721_p3), %s1622_s13  ;;  %s207_s10 = scalar_lea.sflag [#allocation4], %s206_s28 }
  0x50   : > { %s1221_s29 = sshll.u32 %s224_s27, 26  ;;  %1303 = sst [smem:[#allocation11 + $0x4]] (%p1721_p3), %s1622_s13 }
  0x51   : > { %s1222_s14 = sadd.s32 134217728, %s1221_s29  ;;  %1304 = sst [smem:[#allocation11 + $0x5]] (%p1721_p3), %s1623_s2 }
  0x52   : > { %s1624_s30 = smov 131072  }
  0x53   : > { %1305 = dma.general (%p1721_p3), %s219_s3, 8192, %s233_s8, %s207_s10, %s1624_s30, [#allocation11], %s1222_s14, 0  }
  0x54 PF: > { %257 = sbr.rel (%p1761_p5) target bundleno = 766 (0x2fe), region = 36  ;;  %s259_s20 = sand.u32 (!%p1761_p5), 1, %s1589_s19  }
  0x55   : > { %s1224_s23 = sshll.u32 (!%p1761_p5), %s259_s20, 9  ;;  %s260_s24 = scalar_lea.sflag (!%p1761_p5), [#allocation4], %s259_s20 }
  0x56   : > { %s1817_s17 = scalar_lea.vmem (!%p1761_p5), [#allocation3], %s1224_s23 }
  0x59   : > { %1560 = dma.done.wait (%p1735_p7), %s260_s24, 8192  }
  0x5a   : > { %1562 = vsyncadd (%p1735_p7), %s260_s24, 4294959104  ;;  %p2100_p6 = scmp.ne.s32.totalorder %s2089_s7, 0 }
  0x5c   : > { %1564 = dma.done.wait (%p2100_p6), [#allocation7], 2064  }
  0x5d   : > { %1566 = vsyncadd (%p2100_p6), [#allocation7], 4294965232  ;;  %s298_s3 = sand.u32 1, %s1577_s16   ;;  %s1228_s6 = sshll.u32 %s1601_s22, 1 }
  0x5e   : > { %s1227_s26 = sshll.u32 %s298_s3, 4  ;;  %p302_p3 = scmp.lt.s32.totalorder %s1228_s6, 5 }
  0x5f   : > { %s1834_s27 = scalar_lea.vmem [#allocation9], %s1227_s26  ;;  %p1230_p7 = scmp.ne.s32.totalorder %s1597_s21, 0 }
  0x60   : > { %s2122_s6 = smov (!%p302_p3, %s1228_s6), 5 }
  0x61   : > { %s1229_s28 = sshll.u32 %s2122_s6, 3  ;;  %313 = sbr.rel (%p1230_p7) target bundleno = 104 (0x68), region = 52 }
  0x62   : > { %s305_s9 = scalar_lea.vmem %s2067_s0, %s1229_s28 }
  0x66   : > { %v1625_v0 = vmov 0.0  }
  0x67   : > { %314 = vst [vmem:[#allocation2] sm:$0xff] %v1625_v0  ;;  %315 = vst [vmem:[#allocation2 + $0x8] sm:$0xff] %v1625_v0 }
  0x68 PF: > { %v316_v1 = vld [vmem:[%s305_s9] sm:$0xff]  ;;  %v317_v2 = vld [vmem:[%s305_s9 + $0x8] sm:$0xff]  ;;  %v1626_v3 = vmov 0   ;;  %v318_v10 = vlaneseq  ;;  %s1231_s7 = sshll.u32 %s1597_s21, 5  ;;  %v353_v45 = vld [vmem:[%s1817_s17] sm:$0xff]  ;;  %vm945_vm4 = vcmask 1041409  }
  0x69   : > { %1431 = vset.pattern.permute.xlu0 %v1626_v3  ;;  %vm323_vm0 = vcmp.gt.s32.totalorder %v316_v1, 1  ;;  %1432 = vset.pattern.permute.xlu1 %v1626_v3  ;;  %vm325_vm1 = vcmp.gt.s32.totalorder %v317_v2, 1  ;;  %v321_v12 = vstv %s1231_s7  ;;  %v354_v46 = vld [vmem:[%s1817_s17 + $0x8] sm:$0xff]  ;;  %v355_v51 = vld [vmem:[%s1817_s17 + $0x10] sm:$0xff]  ;;  %v356_v54 = vld [vmem:[%s1817_s17 + $0x18] sm:$0xff]  ;;  %vm947_vm5 = vcmask 1042434  }
  0x6a   : > { %332 = vperm.xlu0 %1431, %v316_v1   ;;  %v324_v4 = vsel %vm323_vm0, %v316_v1, 1  ;;  %v326_v5 = vsel %vm325_vm1, %v317_v2, 1  ;;  %v319_v11 = vand.u32 127, %v318_v10  ;;  %v1838_v14 = vshrl.u32 %v318_v10, 7  ;;  %v357_v57 = vld [vmem:[%s1817_s17 + $0x20] sm:$0xff]  ;;  %v358_v58 = vld [vmem:[%s1817_s17 + $0x28] sm:$0xff] }
  0x6b   : > { %v327_v6 = vcvt.s32.f32 %v324_v4  ;;  %v328_v7 = vcvt.s32.f32 %v326_v5  ;;  %v361_v10 = vld [vmem:[%s1817_s17 + $0x40] sm:$0xff]  ;;  %vm949_vm6 = vcmask 1043459   ;;  %vm951_vm7 = vcmask 1044484   ;;  %p1232_p12 = scmp.ne.s32.totalorder %s1597_s21, 2 }
  0x6c   : > { %v322_v13 = vadd.s32 %v321_v12, %v319_v11  ;;  %v419_v16 = vsub.s32 0, %v1838_v14  ;;  %v533_v17 = vsub.s32 6, %v1838_v14  ;;  %v552_v18 = vsub.s32 7, %v1838_v14  ;;  %v362_v11 = vld [vmem:[%s1817_s17 + $0x48] sm:$0xff] }
  0x6d   : > { %1433 = vrcp.f32 %v327_v6  ;;  %v438_v24 = vsub.s32 1, %v1838_v14  ;;  %v457_v26 = vsub.s32 2, %v1838_v14  ;;  %v476_v28 = vsub.s32 3, %v1838_v14  ;;  %v360_v6 = vld [vmem:[%s1817_s17 + $0x38] sm:$0xff] }
  0x6e   : > { %335 = vperm.xlu0 %1431, %v317_v2   ;;  %1435 = vrcp.f32 %v328_v7  ;;  %v495_v30 = vsub.s32 4, %v1838_v14  ;;  %v514_v34 = vsub.s32 5, %v1838_v14  ;;  %v359_v2 = vld [vmem:[%s1817_s17 + $0x30] sm:$0xff]  ;;  %vm953_vm8 = vcmask 1045509  }
  0x6f   : > { %vm955_vm9 = vcmask 1046534   ;;  %vm957_vm10 = vcmask 1047559  }
  0x7a   : > { %v1434_v8 = vpop.eup %1433 }
  0x7b   : > { %341 = vperm.xlu1 %1432, %v1434_v8   ;;  %v1436_v9 = vpop.eup %1435 }
  0x7f   : > { %346 = vperm.xlu1 %1432, %v1436_v9  }
  0xe5   : > { %v333_v15 = vpop.permute.xlu0 %332 }
  0xe6   : > { %vm337_vm2 = vcmp.lt.s32.totalorder %v322_v13, %v333_v15 }
  0xe9   : > { %v336_v32 = vpop.permute.xlu0 %335 }
  0xea   : > { %vm338_vm3 = vcmp.lt.s32.totalorder %v322_v13, %v336_v32 }
  0xf6   : > { %v342_v19 = vpop.permute.xlu1 %341 }
  0xf7   : > { %v349_v20 = vsel %vm337_vm2, %v342_v19, 0.0 }
  0xf8   : > { %v420_v21 = vrot.slane %v349_v20, %v419_v16  ;;  %v1845_v22 = vrot.slane %v349_v20, %v533_v17  ;;  %v1849_v23 = vrot.slane %v349_v20, %v552_v18  ;;  %v439_v25 = vrot.slane %v349_v20, %v438_v24 }
  0xf9   : > { %v458_v27 = vrot.slane %v349_v20, %v457_v26  ;;  %v477_v29 = vrot.slane %v349_v20, %v476_v28  ;;  %v496_v31 = vrot.slane %v349_v20, %v495_v30  ;;  %v515_v36 = vrot.slane %v349_v20, %v514_v34  ;;  %v363_v20 = vld [vmem:[%s1817_s17 + $0x50] sm:$0xff] }
  0xfa   : > { %426 = vbcast.lane.b32.xlu1 %v420_v21, 264  ;;  %422 = vbcast.lane.b32.xlu0 %v420_v21, 256  ;;  %v347_v33 = vpop.permute.xlu1 %346 }
  0xfb   : > { %v350_v35 = vsel %vm338_vm3, %v347_v33, 0.0 }
  0xfc   : > { %v572_v37 = vrot.slane %v350_v35, %v419_v16  ;;  %v591_v38 = vrot.slane %v350_v35, %v438_v24  ;;  %v610_v39 = vrot.slane %v350_v35, %v457_v26  ;;  %v629_v40 = vrot.slane %v350_v35, %v476_v28 }
  0xfd   : > { %v648_v41 = vrot.slane %v350_v35, %v495_v30  ;;  %v667_v42 = vrot.slane %v350_v35, %v514_v34  ;;  %v686_v43 = vrot.slane %v350_v35, %v533_v17  ;;  %v705_v44 = vrot.slane %v350_v35, %v552_v18  ;;  %v366_v30 = vld [vmem:[%s1817_s17 + $0x68] sm:$0xff] }
  0xfe   : > { %434 = vbcast.lane.b32.xlu1 %v420_v21, 280  ;;  %430 = vbcast.lane.b32.xlu0 %v420_v21, 272 }
 0x102   : > { %445 = vbcast.lane.b32.xlu1 %v439_v25, 264  ;;  %441 = vbcast.lane.b32.xlu0 %v439_v25, 256 }
 0x106   : > { %453 = vbcast.lane.b32.xlu1 %v439_v25, 280  ;;  %449 = vbcast.lane.b32.xlu0 %v439_v25, 272  ;;  %v364_v25 = vld [vmem:[%s1817_s17 + $0x58] sm:$0xff] }
 0x10a   : > { %464 = vbcast.lane.b32.xlu1 %v458_v27, 264  ;;  %460 = vbcast.lane.b32.xlu0 %v458_v27, 256 }
 0x10e   : > { %472 = vbcast.lane.b32.xlu1 %v458_v27, 280  ;;  %468 = vbcast.lane.b32.xlu0 %v458_v27, 272 }
 0x112   : > { %483 = vbcast.lane.b32.xlu1 %v477_v29, 264  ;;  %479 = vbcast.lane.b32.xlu0 %v477_v29, 256 }
 0x116   : > { %491 = vbcast.lane.b32.xlu1 %v477_v29, 280  ;;  %487 = vbcast.lane.b32.xlu0 %v477_v29, 272  ;;  %v365_v29 = vld [vmem:[%s1817_s17 + $0x60] sm:$0xff] }
 0x11a   : > { %502 = vbcast.lane.b32.xlu1 %v496_v31, 264  ;;  %498 = vbcast.lane.b32.xlu0 %v496_v31, 256 }
 0x11e   : > { %510 = vbcast.lane.b32.xlu1 %v496_v31, 280  ;;  %506 = vbcast.lane.b32.xlu0 %v496_v31, 272 }
 0x122   : > { %517 = vbcast.lane.b32.xlu0 %v515_v36, 256  ;;  %574 = vbcast.lane.b32.xlu1 %v572_v37, 256 }
 0x126   : > { %578 = vbcast.lane.b32.xlu0 %v572_v37, 264  ;;  %593 = vbcast.lane.b32.xlu1 %v591_v38, 256 }
 0x12a   : > { %597 = vbcast.lane.b32.xlu0 %v591_v38, 264  ;;  %612 = vbcast.lane.b32.xlu1 %v610_v39, 256 }
 0x12e   : > { %616 = vbcast.lane.b32.xlu0 %v610_v39, 264  ;;  %582 = vbcast.lane.b32.xlu1 %v572_v37, 272 }
 0x132   : > { %601 = vbcast.lane.b32.xlu0 %v591_v38, 272  ;;  %631 = vbcast.lane.b32.xlu1 %v629_v40, 256 }
 0x136   : > { %635 = vbcast.lane.b32.xlu0 %v629_v40, 264  ;;  %620 = vbcast.lane.b32.xlu1 %v610_v39, 272 }
 0x13a   : > { %650 = vbcast.lane.b32.xlu0 %v648_v41, 256  ;;  %654 = vbcast.lane.b32.xlu1 %v648_v41, 264 }
 0x13e   : > { %521 = vbcast.lane.b32.xlu0 %v515_v36, 264  ;;  %586 = vbcast.lane.b32.xlu1 %v572_v37, 280 }
 0x142   : > { %605 = vbcast.lane.b32.xlu0 %v591_v38, 280  ;;  %639 = vbcast.lane.b32.xlu1 %v629_v40, 272 }
 0x146   : > { %669 = vbcast.lane.b32.xlu0 %v667_v42, 256  ;;  %673 = vbcast.lane.b32.xlu1 %v667_v42, 264 }
 0x14a   : > { %536 = vbcast.lane.b32.xlu0 %v1845_v22, 256  ;;  %540 = vbcast.lane.b32.xlu1 %v1845_v22, 264 }
 0x14e   : > { %624 = vbcast.lane.b32.xlu0 %v610_v39, 280  ;;  %658 = vbcast.lane.b32.xlu1 %v648_v41, 272 }
 0x152   : > { %688 = vbcast.lane.b32.xlu0 %v686_v43, 256  ;;  %692 = vbcast.lane.b32.xlu1 %v686_v43, 264 }
 0x156   : > { %525 = vbcast.lane.b32.xlu0 %v515_v36, 272  ;;  %555 = vbcast.lane.b32.xlu1 %v1849_v23, 256 }
 0x15a   : > { %559 = vbcast.lane.b32.xlu0 %v1849_v23, 264  ;;  %643 = vbcast.lane.b32.xlu1 %v629_v40, 280 }
 0x15e   : > { %677 = vbcast.lane.b32.xlu0 %v667_v42, 272  ;;  %707 = vbcast.lane.b32.xlu1 %v705_v44, 256 }
 0x162   : > { %711 = vbcast.lane.b32.xlu0 %v705_v44, 264  ;;  %544 = vbcast.lane.b32.xlu1 %v1845_v22, 272 }
 0x166   : > { %662 = vbcast.lane.b32.xlu0 %v648_v41, 280  ;;  %696 = vbcast.lane.b32.xlu1 %v686_v43, 272  ;;  %v367_v41 = vld [vmem:[%s1817_s17 + $0x70] sm:$0xff] }
 0x16a   : > { %529 = vbcast.lane.b32.xlu0 %v515_v36, 280  ;;  %563 = vbcast.lane.b32.xlu1 %v1849_v23, 272 }
 0x16c   : > { %v423_v47 = vpop.permute.xlu0 %422  ;;  %v427_v48 = vpop.permute.xlu1 %426 }
 0x16d   : > { %v721_v49 = vmul.f32 %v423_v47, %v353_v45  ;;  %v722_v50 = vmul.f32 %v427_v48, %v354_v46  ;;  %v368_v46 = vld [vmem:[%s1817_s17 + $0x78] sm:$0xff] }
 0x16e   : > { %681 = vbcast.lane.b32.xlu0 %v667_v42, 280  ;;  %715 = vbcast.lane.b32.xlu1 %v705_v44, 272 }
 0x16f   : > { %v785_v52 = vadd.f32 %v722_v50, %v721_v49 }
 0x170   : > { %v431_v53 = vpop.permute.xlu0 %430  ;;  %v435_v55 = vpop.permute.xlu1 %434 }
 0x171   : > { %v723_v56 = vmul.f32 %v431_v53, %v355_v51  ;;  %v724_v60 = vmul.f32 %v435_v55, %v356_v54  ;;  %v370_v53 = vld [vmem:[%s1817_s17 + $0x88] sm:$0xff] }
 0x172   : > { %548 = vbcast.lane.b32.xlu0 %v1845_v22, 280  ;;  %700 = vbcast.lane.b32.xlu1 %v686_v43, 280 }
 0x173   : > { %v786_v59 = vadd.f32 %v785_v52, %v723_v56  ;;  %v369_v52 = vld [vmem:[%s1817_s17 + $0x80] sm:$0xff] }
 0x174   : > { %v442_v61 = vpop.permute.xlu0 %441  ;;  %v446_v62 = vpop.permute.xlu1 %445 }
 0x175   : > { %v787_v63 = vadd.f32 %v786_v59, %v724_v60  ;;  %v725_v0 = vmul.f32 %v442_v61, %v357_v57  ;;  %v726_v1 = vmul.f32 %v446_v62, %v358_v58 }
 0x176   : > { %567 = vbcast.lane.b32.xlu0 %v1849_v23, 280  ;;  %719 = vbcast.lane.b32.xlu1 %v705_v44, 280 }
 0x177   : > { %v788_v3 = vrot.slane %v787_v63, 4  ;;  %v794_v4 = vadd.f32 %v726_v1, %v725_v0  ;;  %v371_v0 = vld [vmem:[%s1817_s17 + $0x90] sm:$0xff] }
 0x178   : > { %v450_v5 = vpop.permute.xlu0 %449  ;;  %v454_v7 = vpop.permute.xlu1 %453 }
 0x179   : > { %v789_v8 = vadd.f32 %v788_v3, %v787_v63  ;;  %v727_v9 = vmul.f32 %v450_v5, %v359_v2  ;;  %v728_v13 = vmul.f32 %v454_v7, %v360_v6  ;;  %v372_v5 = vld [vmem:[%s1817_s17 + $0x98] sm:$0xff] }
 0x17b   : > { %v795_v12 = vadd.f32 %v794_v4, %v727_v9  ;;  %v790_v14 = vrot.slane %v789_v8, 2 }
 0x17c   : > { %v461_v15 = vpop.permute.xlu0 %460  ;;  %v465_v16 = vpop.permute.xlu1 %464 }
 0x17d   : > { %v796_v17 = vadd.f32 %v795_v12, %v728_v13  ;;  %v729_v18 = vmul.f32 %v461_v15, %v361_v10  ;;  %v730_v19 = vmul.f32 %v465_v16, %v362_v11  ;;  %v791_v23 = vadd.f32 %v790_v14, %v789_v8 }
 0x17f   : > { %v797_v21 = vrot.slane %v796_v17, 4  ;;  %v803_v22 = vadd.f32 %v730_v19, %v729_v18  ;;  %v792_v34 = vrot.slane %v791_v23, 1  ;;  %v385_v18 = vld [vmem:[%s1817_s17 + $0x100] sm:$0xff]  ;;  %v386_v19 = vld [vmem:[%s1817_s17 + $0x108] sm:$0xff] }
 0x180   : > { %v469_v24 = vpop.permute.xlu0 %468  ;;  %v473_v26 = vpop.permute.xlu1 %472 }
 0x181   : > { %v798_v27 = vadd.f32 %v797_v21, %v796_v17  ;;  %v731_v28 = vmul.f32 %v469_v24, %v363_v20  ;;  %v732_v33 = vmul.f32 %v473_v26, %v364_v25  ;;  %v793_v48 = vadd.f32 %v792_v34, %v791_v23 }
 0x183   : > { %v799_v31 = vrot.slane %v798_v27, 2  ;;  %v804_v32 = vadd.f32 %v803_v22, %v731_v28  ;;  %v389_v28 = vld [vmem:[%s1817_s17 + $0x120] sm:$0xff] }
 0x184   : > { %v480_v35 = vpop.permute.xlu0 %479  ;;  %v484_v36 = vpop.permute.xlu1 %483 }
 0x185   : > { %v800_v37 = vadd.f32 %v799_v31, %v798_v27  ;;  %v805_v38 = vadd.f32 %v804_v32, %v732_v33  ;;  %v733_v39 = vmul.f32 %v480_v35, %v365_v29  ;;  %v734_v40 = vmul.f32 %v484_v36, %v366_v30  ;;  %v390_v29 = vld [vmem:[%s1817_s17 + $0x128] sm:$0xff] }
 0x187   : > { %v801_v42 = vrot.slane %v800_v37, 1  ;;  %v806_v43 = vrot.slane %v805_v38, 4  ;;  %v812_v44 = vadd.f32 %v734_v40, %v733_v39 }
 0x188   : > { %v488_v45 = vpop.permute.xlu0 %487  ;;  %v492_v47 = vpop.permute.xlu1 %491 }
 0x189   : > { %v802_v49 = vadd.f32 %v801_v42, %v800_v37  ;;  %v807_v50 = vadd.f32 %v806_v43, %v805_v38  ;;  %v735_v51 = vmul.f32 %v488_v45, %v367_v41  ;;  %v736_v57 = vmul.f32 %v492_v47, %v368_v46  ;;  %v387_v38 = vld [vmem:[%s1817_s17 + $0x110] sm:$0xff] }
 0x18b   : > { %v946_v54 = vsel %vm945_vm4, %v802_v49, %v793_v48  ;;  %v808_v55 = vrot.slane %v807_v50, 2  ;;  %v813_v56 = vadd.f32 %v812_v44, %v735_v51 }
 0x18c   : > { %v499_v58 = vpop.permute.xlu0 %498  ;;  %v503_v59 = vpop.permute.xlu1 %502 }
 0x18d   : > { %v809_v60 = vadd.f32 %v808_v55, %v807_v50  ;;  %v814_v61 = vadd.f32 %v813_v56, %v736_v57  ;;  %v737_v62 = vmul.f32 %v499_v58, %v369_v52  ;;  %v738_v63 = vmul.f32 %v503_v59, %v370_v53  ;;  %v391_v53 = vld [vmem:[%s1817_s17 + $0x130] sm:$0xff]  ;;  %v392_v59 = vld [vmem:[%s1817_s17 + $0x138] sm:$0xff] }
 0x18f   : > { %v810_v1 = vrot.slane %v809_v60, 1  ;;  %v815_v2 = vrot.slane %v814_v61, 4  ;;  %v821_v3 = vadd.f32 %v738_v63, %v737_v62 }
 0x190   : > { %v507_v4 = vpop.permute.xlu0 %506  ;;  %v511_v6 = vpop.permute.xlu1 %510 }
 0x191   : > { %v811_v7 = vadd.f32 %v810_v1, %v809_v60  ;;  %v816_v8 = vadd.f32 %v815_v2, %v814_v61  ;;  %v739_v9 = vmul.f32 %v507_v4, %v371_v0  ;;  %v740_v13 = vmul.f32 %v511_v6, %v372_v5  ;;  %v394_v4 = vld [vmem:[%s1817_s17 + $0x148] sm:$0xff] }
 0x193   : > { %v948_v10 = vsel %vm947_vm5, %v811_v7, %v946_v54  ;;  %v817_v11 = vrot.slane %v816_v8, 2  ;;  %v822_v12 = vadd.f32 %v821_v3, %v739_v9  ;;  %v388_v54 = vld [vmem:[%s1817_s17 + $0x118] sm:$0xff]  ;;  %v393_v9 = vld [vmem:[%s1817_s17 + $0x140] sm:$0xff] }
 0x194   : > { %v1890_v14 = vpop.permute.xlu0 %517  ;;  %v575_v15 = vpop.permute.xlu1 %574 }
 0x195   : > { %v818_v16 = vadd.f32 %v817_v11, %v816_v8  ;;  %v823_v17 = vadd.f32 %v822_v12, %v740_v13  ;;  %v753_v26 = vmul.f32 %v575_v15, %v385_v18 }
 0x197   : > { %v819_v20 = vrot.slane %v818_v16, 1  ;;  %v824_v21 = vrot.slane %v823_v17, 4 }
 0x198   : > { %v579_v22 = vpop.permute.xlu0 %578  ;;  %v594_v23 = vpop.permute.xlu1 %593 }
 0x199   : > { %v820_v24 = vadd.f32 %v819_v20, %v818_v16  ;;  %v825_v25 = vadd.f32 %v824_v21, %v823_v17  ;;  %v754_v27 = vmul.f32 %v579_v22, %v386_v19  ;;  %v757_v36 = vmul.f32 %v594_v23, %v389_v28  ;;  %v396_v20 = vld [vmem:[%s1817_s17 + $0x158] sm:$0xff] }
 0x19b   : > { %v950_v30 = vsel %vm949_vm6, %v820_v24, %v948_v10  ;;  %v826_v31 = vrot.slane %v825_v25, 2  ;;  %v857_v32 = vadd.f32 %v754_v27, %v753_v26  ;;  %v395_v10 = vld [vmem:[%s1817_s17 + $0x150] sm:$0xff] }
 0x19c   : > { %v598_v33 = vpop.permute.xlu0 %597  ;;  %v613_v34 = vpop.permute.xlu1 %612 }
 0x19d   : > { %v827_v35 = vadd.f32 %v826_v31, %v825_v25  ;;  %v758_v37 = vmul.f32 %v598_v33, %v390_v29  ;;  %v761_v17 = vmul.f32 %v613_v34, %v393_v9 }
 0x19f   : > { %v828_v39 = vrot.slane %v827_v35, 1  ;;  %v866_v40 = vadd.f32 %v758_v37, %v757_v36 }
 0x1a0   : > { %v617_v41 = vpop.permute.xlu0 %616  ;;  %v583_v42 = vpop.permute.xlu1 %582 }
 0x1a1   : > { %v829_v43 = vadd.f32 %v828_v39, %v827_v35  ;;  %v755_v44 = vmul.f32 %v583_v42, %v387_v38  ;;  %v762_v11 = vmul.f32 %v617_v41, %v394_v4 }
 0x1a3   : > { %v1899_v45 = vsel %vm951_vm7, %v829_v43, %v950_v30  ;;  %v858_v46 = vadd.f32 %v857_v32, %v755_v44  ;;  %v875_v21 = vadd.f32 %v762_v11, %v761_v17  ;;  %v398_v43 = vld [vmem:[%s1817_s17 + $0x168] sm:$0xff] }
 0x1a4   : > { %v602_v47 = vpop.permute.xlu0 %601  ;;  %v1901_v48 = vpop.permute.xlu1 %631 }
 0x1a5   : > { %v759_v57 = vmul.f32 %v602_v47, %v391_v53  ;;  %v399_v47 = vld [vmem:[%s1817_s17 + $0x170] sm:$0xff] }
 0x1a7   : > { %v867_v63 = vadd.f32 %v866_v40, %v759_v57 }
 0x1a8   : > { %v636_v49 = vpop.permute.xlu0 %635  ;;  %v621_v50 = vpop.permute.xlu1 %620 }
 0x1a9   : > { %v763_v18 = vmul.f32 %v621_v50, %v395_v10  ;;  %v766_v53 = vmul.f32 %v636_v49, %v398_v43  ;;  %v373_v10 = vld [vmem:[%s1817_s17 + $0xa0] sm:$0xff] }
 0x1ab   : > { %v876_v26 = vadd.f32 %v875_v21, %v763_v18 }
 0x1ac   : > { %v1903_v51 = vpop.permute.xlu0 %650  ;;  %v1905_v52 = vpop.permute.xlu1 %654 }
 0x1b0   : > { %v1909_v55 = vpop.permute.xlu0 %521  ;;  %v587_v56 = vpop.permute.xlu1 %586 }
 0x1b1   : > { %v756_v58 = vmul.f32 %v587_v56, %v388_v54  ;;  %v401_v54 = vld [vmem:[%s1817_s17 + $0x180] sm:$0xff]  ;;  %v402_v56 = vld [vmem:[%s1817_s17 + $0x188] sm:$0xff] }
 0x1b2   : > { %v769_v49 = vmul.f32 %v1903_v51, %v401_v54  ;;  %v405_v51 = vld [vmem:[%s1817_s17 + $0x1a0] sm:$0xff] }
 0x1b3   : > { %v859_v60 = vadd.f32 %v858_v46, %v756_v58  ;;  %v397_v46 = vld [vmem:[%s1817_s17 + $0x160] sm:$0xff] }
 0x1b4   : > { %v606_v61 = vpop.permute.xlu0 %605  ;;  %v640_v62 = vpop.permute.xlu1 %639 }
 0x1b5   : > { %v860_v0 = vrot.slane %v859_v60, 4  ;;  %v760_v1 = vmul.f32 %v606_v61, %v392_v59  ;;  %v765_v61 = vmul.f32 %v1901_v48, %v397_v46  ;;  %v404_v48 = vld [vmem:[%s1817_s17 + $0x198] sm:$0xff] }
 0x1b6   : > { %v408_v46 = vld [vmem:[%s1817_s17 + $0x1b8] sm:$0xff] }
 0x1b7   : > { %v861_v2 = vadd.f32 %v860_v0, %v859_v60  ;;  %v868_v3 = vadd.f32 %v867_v63, %v760_v1  ;;  %v400_v60 = vld [vmem:[%s1817_s17 + $0x178] sm:$0xff]  ;;  %v767_v63 = vmul.f32 %v640_v62, %v399_v47  ;;  %v403_v0 = vld [vmem:[%s1817_s17 + $0x190] sm:$0xff]  ;;  %v770_v1 = vmul.f32 %v1905_v52, %v402_v56  ;;  %v406_v52 = vld [vmem:[%s1817_s17 + $0x1a8] sm:$0xff] }
 0x1b8   : > { %v1913_v5 = vpop.permute.xlu0 %669  ;;  %v1915_v6 = vpop.permute.xlu1 %673  ;;  %v411_v56 = vld [vmem:[%s1817_s17 + $0x1d0] sm:$0xff] }
 0x1b9   : > { %v862_v7 = vrot.slane %v861_v2, 2  ;;  %v869_v8 = vrot.slane %v868_v3, 4  ;;  %v893_v62 = vadd.f32 %v770_v1, %v769_v49  ;;  %v414_v49 = vld [vmem:[%s1817_s17 + $0x1e8] sm:$0xff] }
 0x1bb   : > { %v863_v12 = vadd.f32 %v862_v7, %v861_v2  ;;  %v870_v13 = vadd.f32 %v869_v8, %v868_v3  ;;  %v884_v2 = vadd.f32 %v766_v53, %v765_v61  ;;  %v374_v3 = vld [vmem:[%s1817_s17 + $0xa8] sm:$0xff]  ;;  %v381_v53 = vld [vmem:[%s1817_s17 + $0xe0] sm:$0xff] }
 0x1bc   : > { %v1919_v15 = vpop.permute.xlu0 %536  ;;  %v1921_v16 = vpop.permute.xlu1 %540 }
 0x1bd   : > { %v871_v19 = vrot.slane %v870_v13, 2  ;;  %v864_v22 = vrot.slane %v863_v12, 1  ;;  %v885_v11 = vadd.f32 %v884_v2, %v767_v63 }
 0x1bf   : > { %v872_v23 = vadd.f32 %v871_v19, %v870_v13  ;;  %v865_v29 = vadd.f32 %v864_v22, %v863_v12  ;;  %v375_v12 = vld [vmem:[%s1817_s17 + $0xb0] sm:$0xff]  ;;  %v742_v13 = vmul.f32 %v1909_v55, %v374_v3 }
 0x1c0   : > { %v625_v24 = vpop.permute.xlu0 %624  ;;  %v659_v25 = vpop.permute.xlu1 %658  ;;  %v407_v55 = vld [vmem:[%s1817_s17 + $0x1b0] sm:$0xff] }
 0x1c1   : > { %v873_v27 = vrot.slane %v872_v23, 1  ;;  %v764_v28 = vmul.f32 %v625_v24, %v396_v20  ;;  %v771_v9 = vmul.f32 %v659_v25, %v403_v0  ;;  %v741_v20 = vmul.f32 %v1890_v14, %v373_v10 }
 0x1c2   : > { %v773_v24 = vmul.f32 %v1913_v5, %v405_v51  ;;  %v774_v25 = vmul.f32 %v1915_v6, %v406_v52 }
 0x1c3   : > { %v874_v30 = vadd.f32 %v873_v27, %v872_v23  ;;  %v877_v31 = vadd.f32 %v876_v26, %v764_v28  ;;  %v894_v21 = vadd.f32 %v893_v62, %v771_v9  ;;  %v376_v26 = vld [vmem:[%s1817_s17 + $0xb8] sm:$0xff]  ;;  %v830_v27 = vadd.f32 %v742_v13, %v741_v20  ;;  %v377_v28 = vld [vmem:[%s1817_s17 + $0xc0] sm:$0xff] }
 0x1c4   : > { %v1924_v32 = vpop.permute.xlu0 %688  ;;  %v1926_v33 = vpop.permute.xlu1 %692  ;;  %v902_v6 = vadd.f32 %v774_v25, %v773_v24  ;;  %v745_v43 = vmul.f32 %v1919_v15, %v377_v28  ;;  %v380_v9 = vld [vmem:[%s1817_s17 + $0xd8] sm:$0xff] }
 0x1c5   : > { %v959_v34 = vsel %vm945_vm4, %v874_v30, %v865_v29  ;;  %v878_v35 = vrot.slane %v877_v31, 4  ;;  %v378_v29 = vld [vmem:[%s1817_s17 + $0xc8] sm:$0xff]  ;;  %v412_v62 = vld [vmem:[%s1817_s17 + $0x1d8] sm:$0xff] }
 0x1c7   : > { %v879_v36 = vadd.f32 %v878_v35, %v877_v31  ;;  %v409_v31 = vld [vmem:[%s1817_s17 + $0x1c0] sm:$0xff] }
 0x1c8   : > { %v526_v37 = vpop.permute.xlu0 %525  ;;  %v1929_v38 = vpop.permute.xlu1 %555  ;;  %v777_v47 = vmul.f32 %v1924_v32, %v409_v31 }
 0x1c9   : > { %v880_v39 = vrot.slane %v879_v36, 2  ;;  %v743_v22 = vmul.f32 %v526_v37, %v375_v12  ;;  %v749_v2 = vmul.f32 %v1929_v38, %v381_v53 }
 0x1cb   : > { %v881_v40 = vadd.f32 %v880_v39, %v879_v36  ;;  %v831_v37 = vadd.f32 %v830_v27, %v743_v22  ;;  %v382_v39 = vld [vmem:[%s1817_s17 + $0xe8] sm:$0xff] }
 0x1cc   : > { %v1931_v41 = vpop.permute.xlu0 %559  ;;  %v644_v42 = vpop.permute.xlu1 %643 }
 0x1cd   : > { %v882_v44 = vrot.slane %v881_v40, 1  ;;  %v768_v4 = vmul.f32 %v644_v42, %v400_v60 }
 0x1cf   : > { %v883_v50 = vadd.f32 %v882_v44, %v881_v40  ;;  %v886_v17 = vadd.f32 %v885_v11, %v768_v4  ;;  %v379_v40 = vld [vmem:[%s1817_s17 + $0xd0] sm:$0xff]  ;;  %v746_v44 = vmul.f32 %v1921_v16, %v378_v29  ;;  %v413_v11 = vld [vmem:[%s1817_s17 + $0x1e0] sm:$0xff] }
 0x1d0   : > { %v678_v57 = vpop.permute.xlu0 %677  ;;  %v1938_v58 = vpop.permute.xlu1 %707  ;;  %v383_v4 = vld [vmem:[%s1817_s17 + $0xf0] sm:$0xff] }
 0x1d1   : > { %v1941_v59 = vsel %vm947_vm5, %v883_v50, %v959_v34  ;;  %v410_v34 = vld [vmem:[%s1817_s17 + $0x1c8] sm:$0xff]  ;;  %v887_v14 = vrot.slane %v886_v17, 4  ;;  %v775_v5 = vmul.f32 %v678_v57, %v407_v55  ;;  %v750_v57 = vmul.f32 %v1931_v41, %v382_v39 }
 0x1d2   : > { %v778_v50 = vmul.f32 %v1926_v33, %v410_v34  ;;  %v839_v33 = vadd.f32 %v746_v44, %v745_v43 }
 0x1d3   : > { %v888_v61 = vadd.f32 %v887_v14, %v886_v17  ;;  %v903_v16 = vadd.f32 %v902_v6, %v775_v5  ;;  %v848_v13 = vadd.f32 %v750_v57, %v749_v2 }
 0x1d4   : > { %v1949_v7 = vpop.permute.xlu0 %711  ;;  %v545_v8 = vpop.permute.xlu1 %544  ;;  %v911_v10 = vadd.f32 %v778_v50, %v777_v47 }
 0x1d5   : > { %v747_v63 = vmul.f32 %v545_v8, %v379_v40  ;;  %v415_v8 = vld [vmem:[%s1817_s17 + $0x1f0] sm:$0xff]  ;;  %v889_v51 = vrot.slane %v888_v61, 2  ;;  %v782_v52 = vmul.f32 %v1949_v7, %v414_v49  ;;  %v416_v7 = vld [vmem:[%s1817_s17 + $0x1f8] sm:$0xff] }
 0x1d7   : > { %v840_v17 = vadd.f32 %v839_v33, %v747_v63  ;;  %v890_v31 = vadd.f32 %v889_v51, %v888_v61 }
 0x1d8   : > { %v663_v18 = vpop.permute.xlu0 %662  ;;  %v697_v19 = vpop.permute.xlu1 %696 }
 0x1d9   : > { %v772_v23 = vmul.f32 %v663_v18, %v404_v48  ;;  %v779_v3 = vmul.f32 %v697_v19, %v411_v56  ;;  %v891_v61 = vrot.slane %v890_v31, 1 }
 0x1db   : > { %v895_v30 = vadd.f32 %v894_v21, %v772_v23  ;;  %v781_v23 = vmul.f32 %v1938_v58, %v413_v11  ;;  %v912_v24 = vadd.f32 %v911_v10, %v779_v3 }
 0x1dc   : > { %v530_v35 = vpop.permute.xlu0 %529  ;;  %v564_v36 = vpop.permute.xlu1 %563 }
 0x1dd   : > { %v744_v42 = vmul.f32 %v530_v35, %v376_v26  ;;  %v896_v54 = vrot.slane %v895_v30, 4  ;;  %v751_v19 = vmul.f32 %v564_v36, %v383_v4  ;;  %v920_v34 = vadd.f32 %v782_v52, %v781_v23 }
 0x1de   : > { %v892_v4 = vadd.f32 %v891_v61, %v890_v31 }
 0x1df   : > { %v832_v60 = vadd.f32 %v831_v37, %v744_v42  ;;  %v897_v12 = vadd.f32 %v896_v54, %v895_v30  ;;  %v384_v30 = vld [vmem:[%s1817_s17 + $0xf8] sm:$0xff]  ;;  %v849_v39 = vadd.f32 %v848_v13, %v751_v19 }
 0x1e0   : > { %v682_v0 = vpop.permute.xlu0 %681  ;;  %v716_v15 = vpop.permute.xlu1 %715  ;;  %v961_v13 = vsel %vm949_vm6, %v892_v4, %v1941_v59  ;;  %v352_v19 = vld [vmem:[#allocation2 + $0x8] sm:$0xff] }
 0x1e1   : > { %v833_v32 = vrot.slane %v832_v60, 4  ;;  %v776_v1 = vmul.f32 %v682_v0, %v408_v46  ;;  %v783_v25 = vmul.f32 %v716_v15, %v415_v8  ;;  %v898_v26 = vrot.slane %v897_v12, 2 }
 0x1e3   : > { %v834_v41 = vadd.f32 %v833_v32, %v832_v60  ;;  %v904_v48 = vadd.f32 %v903_v16, %v776_v1  ;;  %v921_v58 = vadd.f32 %v920_v34, %v783_v25  ;;  %v899_v44 = vadd.f32 %v898_v26, %v897_v12 }
 0x1e4   : > { %v549_v18 = vpop.permute.xlu0 %548  ;;  %v701_v20 = vpop.permute.xlu1 %700 }
 0x1e5   : > { %v835_v38 = vrot.slane %v834_v41, 2  ;;  %v905_v21 = vrot.slane %v904_v48, 4  ;;  %v748_v22 = vmul.f32 %v549_v18, %v380_v9  ;;  %v780_v55 = vmul.f32 %v701_v20, %v412_v62  ;;  %v351_v20 = vld [vmem:[#allocation2] sm:$0xff] }
 0x1e6   : > { %v900_v16 = vrot.slane %v899_v44, 1 }
 0x1e7   : > { %v836_v27 = vadd.f32 %v835_v38, %v834_v41  ;;  %v906_v28 = vadd.f32 %v905_v21, %v904_v48  ;;  %v841_v29 = vadd.f32 %v840_v17, %v748_v22  ;;  %v913_v14 = vadd.f32 %v912_v24, %v780_v55 }
 0x1e8   : > { %v568_v35 = vpop.permute.xlu0 %567  ;;  %v720_v37 = vpop.permute.xlu1 %719  ;;  %v901_v12 = vadd.f32 %v900_v16, %v899_v44 }
 0x1e9   : > { %v837_v36 = vrot.slane %v836_v27, 1  ;;  %v907_v5 = vrot.slane %v906_v28, 2  ;;  %v842_v40 = vrot.slane %v841_v29, 4  ;;  %v914_v42 = vrot.slane %v913_v14, 4 }
 0x1ea   : > { %v752_v6 = vmul.f32 %v568_v35, %v384_v30  ;;  %v784_v43 = vmul.f32 %v720_v37, %v416_v7  ;;  %v962_v17 = vsel %vm951_vm7, %v901_v12, %v961_v13 }
 0x1eb   : > { %v838_v46 = vadd.f32 %v837_v36, %v836_v27  ;;  %v843_v47 = vadd.f32 %v842_v40, %v841_v29  ;;  %v908_v50 = vadd.f32 %v907_v5, %v906_v28  ;;  %v915_v53 = vadd.f32 %v914_v42, %v913_v14 }
 0x1ec   : > { %v850_v54 = vadd.f32 %v849_v39, %v752_v6  ;;  %v922_v56 = vadd.f32 %v921_v58, %v784_v43 }
 0x1ed   : > { %v954_v60 = vsel %vm953_vm8, %v838_v46, %v1899_v45  ;;  %v844_v57 = vrot.slane %v843_v47, 2  ;;  %v916_v63 = vrot.slane %v915_v53, 2  ;;  %v909_v32 = vrot.slane %v908_v50, 1 }
 0x1ee   : > { %v851_v0 = vrot.slane %v850_v54, 4  ;;  %v923_v15 = vrot.slane %v922_v56, 4 }
 0x1ef   : > { %v845_v49 = vadd.f32 %v844_v57, %v843_v47  ;;  %v917_v1 = vadd.f32 %v916_v63, %v915_v53  ;;  %v910_v41 = vadd.f32 %v909_v32, %v908_v50 }
 0x1f0   : > { %v852_v33 = vadd.f32 %v851_v0, %v850_v54  ;;  %v924_v2 = vadd.f32 %v923_v15, %v922_v56 }
 0x1f1   : > { %v846_v3 = vrot.slane %v845_v49, 1  ;;  %v918_v9 = vrot.slane %v917_v1, 1  ;;  %v963_v18 = vsel %vm953_vm8, %v910_v41, %v962_v17 }
 0x1f2   : > { %v853_v10 = vrot.slane %v852_v33, 2  ;;  %v925_v11 = vrot.slane %v924_v2, 2 }
 0x1f3   : > { %v847_v8 = vadd.f32 %v846_v3, %v845_v49  ;;  %v919_v62 = vadd.f32 %v918_v9, %v917_v1 }
 0x1f4   : > { %v854_v48 = vadd.f32 %v853_v10, %v852_v33  ;;  %v926_v45 = vadd.f32 %v925_v11, %v924_v2 }
 0x1f5   : > { %v956_v22 = vsel %vm955_vm9, %v847_v8, %v954_v60  ;;  %v964_v23 = vsel %vm955_vm9, %v919_v62, %v963_v18 }
 0x1f6   : > { %v855_v51 = vrot.slane %v854_v48, 1  ;;  %v927_v52 = vrot.slane %v926_v45, 1 }
 0x1f8   : > { %v856_v38 = vadd.f32 %v855_v51, %v854_v48  ;;  %v928_v21 = vadd.f32 %v927_v52, %v926_v45 }
 0x1f9   : > { %975 = sbr.rel (%p1232_p12) target bundleno = 741 (0x2e5), region = 56 }
 0x1fa   : > { %v958_v24 = vsel %vm957_vm10, %v856_v38, %v956_v22  ;;  %v965_v25 = vsel %vm957_vm10, %v928_v21, %v964_v23 }
 0x1fb   : > { %v968_v55 = vadd.f32 %v958_v24, %v351_v20  ;;  %v969_v26 = vadd.f32 %v965_v25, %v352_v19 }
 0x1fd   : > { %970 = vst [vmem:[#allocation2] sm:$0xff] %v968_v55  ;;  %971 = vst [vmem:[#allocation2 + $0x8] sm:$0xff] %v969_v26 }
 0x1fe   : > { %v993_v59 = vld [vmem:[#allocation6 + $0x78] sm:$0xff]  ;;  %v992_v27 = vld [vmem:[#allocation6 + $0x70] sm:$0xff]  ;;  %v991_v28 = vld [vmem:[#allocation6 + $0x68] sm:$0xff] }
 0x1ff   : > { %1258 = vmatprep.subr.mxu0 %v993_v59  ;;  %v990_v29 = vld [vmem:[#allocation6 + $0x60] sm:$0xff]  ;;  %v989_v7 = vld [vmem:[#allocation6 + $0x58] sm:$0xff]  ;;  %v988_v31 = vld [vmem:[#allocation6 + $0x50] sm:$0xff] }
 0x200   : > { %1259 = vmatpush3.msra.mxu0 %v993_v59  ;;  %v987_v34 = vld [vmem:[#allocation6 + $0x48] sm:$0xff]  ;;  %v986_v14 = vld [vmem:[#allocation6 + $0x40] sm:$0xff]  ;;  %v985_v35 = vld [vmem:[#allocation6 + $0x38] sm:$0xff] }
 0x201   : > { %1260 = vmatprep.subr.mxu0 %v992_v27  ;;  %v984_v37 = vld [vmem:[#allocation6 + $0x30] sm:$0xff]  ;;  %v983_v36 = vld [vmem:[#allocation6 + $0x28] sm:$0xff]  ;;  %v982_v39 = vld [vmem:[#allocation6 + $0x20] sm:$0xff] }
 0x202   : > { %1261 = vmatpush3.msra.mxu0 %v992_v27  ;;  %v981_v5 = vld [vmem:[#allocation6 + $0x18] sm:$0xff]  ;;  %v980_v40 = vld [vmem:[#allocation6 + $0x10] sm:$0xff]  ;;  %v979_v58 = vld [vmem:[#allocation6 + $0x8] sm:$0xff] }
 0x203   : > { %1262 = vmatprep.subr.mxu0 %v991_v28  ;;  %v978_v42 = vld [vmem:[#allocation6] sm:$0xff] }
 0x204   : > { %v976_v30 = vld [vmem:[#allocation2] sm:$0xff]  ;;  %1263 = vmatpush3.msra.mxu0 %v991_v28  ;;  %v977_v6 = vld [vmem:[#allocation2 + $0x8] sm:$0xff]  ;;  %v1233_v43 = vld [vmem:[#allocation8] ss:$0 sm:$0xff] }
 0x205   : > { %1290 = vmatprep.mubr.f32.mxu0 %v976_v30  ;;  %1264 = vmatprep.subr.mxu0 %v990_v29 }
 0x206   : > { %1265 = vmatpush3.msra.mxu0 %v990_v29 }
 0x207   : > { %1266 = vmatprep.subr.mxu0 %v989_v7 }
 0x208   : > { %1267 = vmatpush3.msra.mxu0 %v989_v7 }
 0x209   : > { %1268 = vmatprep.subr.mxu0 %v988_v31 }
 0x20a   : > { %1269 = vmatpush3.msra.mxu0 %v988_v31 }
 0x20b   : > { %1270 = vmatprep.subr.mxu0 %v987_v34 }
 0x20c   : > { %1271 = vmatpush3.msra.mxu0 %v987_v34 }
 0x20d   : > { %1272 = vmatprep.subr.mxu0 %v986_v14 }
 0x20e   : > { %1273 = vmatpush3.msra.mxu0 %v986_v14 }
 0x20f   : > { %1274 = vmatprep.subr.mxu0 %v985_v35 }
 0x210   : > { %1275 = vmatpush3.msra.mxu0 %v985_v35 }
 0x211   : > { %1276 = vmatprep.subr.mxu0 %v984_v37 }
 0x212   : > { %1277 = vmatpush3.msra.mxu0 %v984_v37 }
 0x213   : > { %1278 = vmatprep.subr.mxu0 %v983_v36 }
 0x214   : > { %1279 = vmatpush3.msra.mxu0 %v983_v36 }
 0x215   : > { %1280 = vmatprep.subr.mxu0 %v982_v39 }
 0x216   : > { %1281 = vmatpush3.msra.mxu0 %v982_v39 }
 0x217   : > { %1282 = vmatprep.subr.mxu0 %v981_v5 }
 0x218   : > { %1283 = vmatpush3.msra.mxu0 %v981_v5 }
 0x219   : > { %1284 = vmatprep.subr.mxu0 %v980_v40 }
 0x21a   : > { %1285 = vmatpush3.msra.mxu0 %v980_v40 }
 0x21b   : > { %1286 = vmatprep.subr.mxu0 %v979_v58 }
 0x21c   : > { %1287 = vmatpush3.msra.mxu0 %v979_v58 }
 0x21d   : > { %1288 = vmatprep.subr.mxu0 %v978_v42 }
 0x21e   : > { %1289 = vmatpush3.msra.mxu0 %v978_v42 }
 0x21f   : > { %1291 = vmatmul.mubr.f32.vlgmr.msra.gmra.mxu0 %v977_v6 }
 0x2df   : > { %v1292_v44 = vpop.f32.mrf.mxu0 }
 0x2e0   : > { %v1073_v46 = vadd.f32 %v1292_v44, %v1233_v43 }
 0x2e1   : > { %v1067_v47 = vpop.f32.mrf.mxu0 }
 0x2e2   : > { %1077 = vst [vmem:[%s1834_s27 + $0x8] sm:$0xff] %v1073_v46  ;;  %v1068_v50 = vadd.f32 %v1233_v43, %v1067_v47 }
 0x2e4   : > { %1076 = vst [vmem:[%s1834_s27] sm:$0xff] %v1068_v50 }
 0x2e5 PF: > { %s1239_s21 = sshll.u32 %s1601_s22, 8  ;;  %s1092_s14 = sshll.u32 %s1834_s27, 4  ;;  %s2003_s14 = int_to_ptr.vmem [resolvable:$true] %s1092_s14 }
 0x2e6   : > { %s2000_s13 = scalar_lea.hbm %s2071_s4, %s1239_s21  ;;  %s2007_s2 = scalar_lea.sflag [#allocation5], %s298_s3 }
 0x2e7   : > { %s1489_s10 = scalar_lea.vmem %s2003_s14, 256  ;;  %p2101_p9 = scmp.ne.s32.totalorder %s2092_s12, 0 }
 0x2e8   : > { %p1490_p5 = scmp.ne.s32.totalorder %s2003_s14, %s1489_s10  ;;  %s1627_s22 = smov [#allocation9]  }
 0x2e9   : > { %s1493_s30 = sshll.u32 %s1627_s22, 4  ;;  %s1494_s30 = int_to_ptr.vmem [resolvable:$false] %s1493_s30 }
 0x2ea   : > { %p1491_p10 = pnand %p1490_p5, %p2101_p9  ;;  %s1495_s20 = scalar_lea.vmem %s1494_s30, 512 }
 0x2eb   : > { %p1496_p11 = scmp.lt.s32.totalorder %s2003_s14, %s1494_s30  ;;  %p1497_p13 = scmp.lt.s32.totalorder %s1495_s20, %s1489_s10 }
 0x2ec   : > { %p1492_p8 = pneg %p1491_p10 }
 0x2ed   : > { %p1498_p1 = por %p1497_p13, %p1496_p11 }
 0x2ef   : > { %p1499_p4 = pnand %p1498_p1, %p1492_p8 }
 0x2f1   : > { %1502 = shalt.err (!%p1499_p4)
}
 0x2f2   : > { %s1503_s23 = scalar_lea.hbm %s2000_s13, 256  ;;  %s1507_s3 = scalar_lea.hbm %s2071_s4, 768 }
 0x2f3   : > { %p1504_p0 = scmp.ne.s32.totalorder %s2000_s13, %s1503_s23  ;;  %p1508_p3 = scmp.lt.s32.totalorder %s2000_s13, %s2071_s4 }
 0x2f4   : > { %p1509_p7 = scmp.lt.s32.totalorder %s1507_s3, %s1503_s23 }
 0x2f5   : > { %p1505_p2 = pnand %p1504_p0, %p2101_p9 }
 0x2f6   : > { %p1510_p12 = por %p1509_p7, %p1508_p3 }
 0x2f7   : > { %p1506_p6 = pneg %p1505_p2 }
 0x2f9   : > { %p1511_p5 = pnand %p1510_p12, %p1506_p6 }
 0x2fb   : > { %1514 = shalt.err (!%p1511_p5)
}
 0x2fc   : > { %s1628_s28 = smov 128   ;;  %s1629_s8 = smov 8  }
 0x2fd   : > { %1311 = dma.vmem_to_hbm [thread:$0]  (%p2101_p9), %s2003_s14, 256, %s2000_s13, %s2007_s2, %s1628_s28, %s1628_s28, %s1629_s8  }
 0x2fe PF: > { %p1328_p10 = scmp.ge.s32.totalorder %s1613_s25, 2  ;;  %s1107_s5 = sand.u32 1, %s1573_s15  }
 0x2ff   : > { %p2102_p8 = scmp.ne.s32.totalorder %s2095_s18, 0  ;;  %s1108_s9 = scalar_lea.sflag [#allocation5], %s1107_s5 }
 0x301   : > { %p1321_p11 = pnand %p1328_p10, %p2102_p8 }
 0x303   : > { %p1322_p13 = pneg %p1321_p11 }
 0x305   : > { %1568 = dma.done.wait (%p1322_p13), %s1108_s9, 256  }
 0x306   : > { %1570 = vsyncadd (%p1322_p13), %s1108_s9, 4294967040  ;;  %s21_s25 = sadd.s32 1, %s1613_s25   ;;  %s2103_s27 = sld [smem:[#allocation16_spill]] }
 0x307   : > { %p18_p1 = scmp.ge.s32.totalorder %s21_s25, 11   ;;  %s2104_s17 = sld [smem:[#allocation22_spill]] }
 0x308   : > { %s2105_s12 = sld [smem:[#allocation17_spill]]  ;;  %s2111_s15 = smov %s1577_s16 }
 0x309   : > { %s2106_s20 = sld [smem:[#allocation23_spill]]  ;;  %s2113_s18 = smov %s1589_s19 }
 0x30a   : > { %s2107_s21 = sld [smem:[#allocation18_spill]]  ;;  %20 = sbr.rel (!%p18_p1) target bundleno = 13 (0xd), region = 105 }
 0x30b   : > { %s2108_s22 = sld [smem:[#allocation19_spill]] }
 0x30c   : > { %s2109_s23 = sld [smem:[#allocation20_spill]]  ;;  %s2112_s16 = smov %s2103_s27 }
 0x30d   : > { %s2110_s24 = sld [smem:[#allocation21_spill]] }
 0x30e   : > { %s2114_s19 = smov %s2105_s12 }
 0x30f   :  { %1113 = vsyncpa [#allocation4], 1 }
 0x310   :  { %1115 = vsyncpa [#allocation4 + $0x1], 1 }
 0x311   :  { %1116 = vsyncpa [#allocation7], 1 }
 0x312   :  { %1117 = vsyncpa [#allocation5], 1 }
 0x313   :  { %1119 = vsyncpa [#allocation5 + $0x1], 1 }

</bundles_post_ra>
